<compile_context>
chip_gen: v7x
topology: tpu7x:2x2x1
jax: 0.10.0
libtpu: 0.0.40
codegen_flags: <defaults>
</compile_context>

<pallas_src>
import functools

import jax
import jax.numpy as jnp
from jax.experimental import pallas as pl
from jax.experimental.pallas import tpu as pltpu


@functools.cache
def _roll_sign() -> int:
    """Detect pltpu.roll's rotation convention once per process.

    Returns -1 if pltpu.roll matches jnp.roll (element i moves to i + shift),
    +1 if it rotates the opposite way.  The kernel's static shift amounts are
    scaled by this sign, so either hardware convention gives identical results.
    """
    def probe(x_ref, o_ref):
        o_ref[...] = pltpu.roll(x_ref[...], 1, 1)

    x = jnp.broadcast_to(jnp.arange(128, dtype=jnp.float32), (8, 128))
    y = pl.pallas_call(
        probe, out_shape=jax.ShapeDtypeStruct((8, 128), jnp.float32))(x)
    return -1 if int(y[0, 0]) == 127 else 1


def _decoder_kernel(xb_ref, xl_ref, u_ref, m_ref, w_ref, b_ref, o_ref, *,
                    w2: int, sign: int):
    """One batch image: in-VMEM upsample + concat + 3x3 conv + bias + ReLU."""
    xb = xb_ref[0]                       # (Cin,  H*W)    raw bottom, flat spatial
    xl = xl_ref[0]                       # (Cenc, H2*W2)  raw skip,   flat spatial
    L = xl.shape[1]

    # Nearest 2x upsample as a single MXU matmul: (Cin, H*W) @ (H*W, H2*W2).
    up = jnp.dot(xb, u_ref[...],
                 preferred_element_type=jnp.float32).astype(xl.dtype)

    # Channel concat (torch.cat([up, left], dim=1)) along sublanes.
    z = jnp.concatenate([up, xl], axis=0)                 # (Ctot, L)

    # im2col: 9 conv taps = cyclic lane rolls + zero-padding border masks,
    # stacked along sublanes.  Taps ordered (dy, dx) to match the weight layout.
    taps = []
    t = 0
    for dy in range(3):
        for dx in range(3):
            s = (dy - 1) * w2 + (dx - 1)          # flat-index offset of this tap
            zt = z if s == 0 else pltpu.roll(z, (sign * s) % L, 1)
            if not (dy == 1 and dx == 1):         # center tap needs no mask
                zt = zt * m_ref[t:t + 1, :]
            taps.append(zt)
            t += 1
    patches = jnp.concatenate(taps, axis=0)               # (9*Ctot, L)

    # Single MXU matmul: (Cout, 9*Ctot) @ (9*Ctot, L), f32 accumulation.
    acc = jnp.dot(w_ref[...], patches, preferred_element_type=jnp.float32)
    acc = acc + b_ref[...]                                # (Cout, 1) broadcast
    o_ref[0] = jnp.maximum(acc, 0.0).astype(o_ref.dtype)  # lane-dense store


def decoder_block_forward(bottom, left, weight, bias, *,
                          compute_dtype=jnp.float32):
    """bottom: (N, Cin, H, W); left: (N, Cenc, 2H, 2W);
    weight: (Cout, Cin+Cenc, 3, 3) OIHW; bias: (Cout,).
    Returns (N, Cout, 2H, 2W) float32 in NCHW, matching the PyTorch block.
    Set compute_dtype=jnp.bfloat16 on v6e/v7x for bf16 MXU operands (f32 acc)."""
    N, Cin, H, W = bottom.shape
    Nl, Cenc, H2, W2 = left.shape
    Cout, Ctot, KH, KW = weight.shape
    assert Nl == N and H2 == 2 * H and W2 == 2 * W
    assert Ctot == Cin + Cenc and KH == 3 and KW == 3
    L = H2 * W2

    # Layout-only reshapes (free): spatial goes onto the lane axis. No wrapper
    # upsample / pad / transpose — those now happen inside the kernel.
    xb = bottom.reshape(N, Cin, H * W).astype(compute_dtype)
    xl = left.reshape(N, Cenc, L).astype(compute_dtype)

    # Constant 0/1 nearest-upsample matrix: U[y*W+x, y2*W2+x2] = (y2//2, x2//2)==(y, x).
    r = jnp.arange(H * W)
    ry, rx = r // W, r % W
    c = jnp.arange(L)
    cy, cx = c // W2, c % W2
    U = ((cy[None, :] // 2 == ry[:, None]) &
         (cx[None, :] // 2 == rx[:, None])).astype(compute_dtype)   # (H*W, L)

    # Zero-padding border masks for the 9 taps of the 3x3 'same' conv.
    masks = []
    for dy in range(3):
        for dx in range(3):
            valid = ((cy + dy - 1 >= 0) & (cy + dy - 1 < H2) &
                     (cx + dx - 1 >= 0) & (cx + dx - 1 < W2))
            masks.append(valid)
    masks = jnp.stack(masks, axis=0).astype(compute_dtype)           # (9, L)

    # Weights as one (Cout, 9*Ctot) matrix; K order = (tap, concat-channel),
    # matching the in-kernel patch rows (the channel concat is folded in here).
    w2d = jnp.transpose(weight, (0, 2, 3, 1)).reshape(Cout, 9 * Ctot)
    w2d = w2d.astype(compute_dtype)
    b2 = bias.reshape(Cout, 1).astype(jnp.float32)

    kernel = functools.partial(_decoder_kernel, w2=W2, sign=_roll_sign())

    # NOTE: full-image blocks per batch element are fine at decoder-head sizes
    # tested here; for large images add a row-tiled grid axis with a 1-row halo
    # folded into the tap masks (per perf review item on spatial tiling).
    out_flat = pl.pallas_call(
        kernel,
        out_shape=jax.ShapeDtypeStruct((N, Cout, L), jnp.float32),
        grid_spec=pltpu.PrefetchScalarGridSpec(
            num_scalar_prefetch=0,
            grid=(N,),
            in_specs=[
                pl.BlockSpec((1, Cin, H * W), lambda n: (n, 0, 0)),
                pl.BlockSpec((1, Cenc, L),    lambda n: (n, 0, 0)),
                pl.BlockSpec((H * W, L),      lambda n: (0, 0)),   # resident
                pl.BlockSpec((9, L),          lambda n: (0, 0)),   # resident
                pl.BlockSpec((Cout, 9 * Ctot), lambda n: (0, 0)),  # resident
                pl.BlockSpec((Cout, 1),       lambda n: (0, 0)),   # resident
            ],
            out_specs=pl.BlockSpec((1, Cout, L), lambda n: (n, 0, 0)),
        ),
        compiler_params=pltpu.CompilerParams(
            dimension_semantics=("parallel",),   # batch axis -> 2 TCs on v7x
        ),
    )(xb, xl, U, masks, w2d, b2)

    # Output is already NCHW-flat and lane-dense; only a free reshape remains.
    return out_flat.reshape(N, Cout, H2, W2)


def _reference(bottom, left, weight, bias):
    """Pure-JAX reference matching PyTorch semantics exactly."""
    up = jnp.repeat(jnp.repeat(bottom, 2, axis=2), 2, axis=3)
    x = jnp.concatenate([up, left], axis=1)
    y = jax.lax.conv_general_dilated(
        x, weight, window_strides=(1, 1), padding=((1, 1), (1, 1)),
        dimension_numbers=("NCHW", "OIHW", "NCHW"))
    y = y + bias[None, :, None, None]
    return jnp.maximum(y, 0.0)


if __name__ == "__main__":
    key = jax.random.PRNGKey(0)
    N, Cin, Cenc, Cout = 2, 4, 4, 8
    H = W = 8                                    # bottom spatial; output is 16x16

    k0, k1, k2, k3 = jax.random.split(key, 4)
    bottom = jax.random.normal(k0, (N, Cin, H, W), dtype=jnp.float32)
    left = jax.random.normal(k1, (N, Cenc, 2 * H, 2 * W), dtype=jnp.float32)
    # Deterministic synthetic conv parameters (Conv2d(Cin+Cenc, Cout, 3, padding=1)).
    weight = 0.1 * jax.random.normal(k2, (Cout, Cin + Cenc, 3, 3), dtype=jnp.float32)
    bias = 0.1 * jax.random.normal(k3, (Cout,), dtype=jnp.float32)

    out = jax.block_until_ready(decoder_block_forward(bottom, left, weight, bias))
    ref = jax.block_until_ready(_reference(bottom, left, weight, bias))

    assert out.shape == (N, Cout, 2 * H, 2 * W), out.shape
    err = float(jnp.max(jnp.abs(out - ref)))
    assert err < 1e-3, err
    print("KERNEL_OK")
</pallas_src>

<mosaic_0001>
module attributes {stable_mosaic.version = 11 : i64} {
  func.func @probe(%arg0: memref<8x128xf32, #tpu.memory_space<vmem>>, %arg1: memref<8x128xf32, #tpu.memory_space<vmem>>) attributes {dimension_semantics = [], scalar_prefetch = 0 : i64, scratch_operands = 0 : i64, tpu.core_type = #tpu.core_type<tc>} {
    %c0 = arith.constant 0 : index
    %c0_0 = arith.constant 0 : index
    %0 = vector.load %arg0[%c0, %c0_0] : memref<8x128xf32, #tpu.memory_space<vmem>>, vector<8x128xf32>
    %c1_i32 = arith.constant 1 : i32
    %1 = tpu.dynamic_rotate %0 by %c1_i32 dim 1 : vector<8x128xf32>, i32 -> vector<8x128xf32>
    %c0_1 = arith.constant 0 : index
    %c0_2 = arith.constant 0 : index
    %2 = vector.load %arg1[%c0_1, %c0_2] : memref<8x128xf32, #tpu.memory_space<vmem>>, vector<8x128xf32>
    tpu.vector_store %arg1[%c0_1, %c0_2], %1 {strides = array<i32>} : memref<8x128xf32, #tpu.memory_space<vmem>>, vector<8x128xf32>,
    return
  }
}

</mosaic_0001>

<bundles_post_ra>
// kernel: tpu_custom_call.1
= control target key start
LH: loop header
LB: loop body
LE: loop exit
PB: predicated region body
PF: predicated region fallthrough
CT: control target
= control target key end

     0   :  { %6 = vsyncpa [#allocation3], 0  ;;  %s128_s0 = inlined_call_operand.hbm [shape: f32[8,128], index: 0, kind: input, shape index: {}]   ;;  %s129_s1 = inlined_call_operand.hbm [shape: f32[8,128], index: 1, kind: output, shape index: {}]  }
   0x1   :  { %7 = vsyncpa [#allocation4], 0  ;;  %s91_s6 = smov [#allocation2]   ;;  %s43_s10 = scalar_lea.hbm %s128_s0, 128 }
   0x2   :  { %s14_s7 = sshll.u32 %s91_s6, 4  ;;  %p44_p0 = scmp.ne.s32.totalorder %s128_s0, %s43_s10  ;;  %s15_s7 = int_to_ptr.vmem [resolvable:$true] %s14_s7 }
   0x3   :  { %p47_p1 = scmp.lt.u32.totalorder %s43_s10, %s128_s0 }
   0x5   :  { %p49_p2 = pnand %p47_p1, %p44_p0 }
   0x7   :  { %52 = shalt.err (!%p49_p2)
}
   0x8   :  { %s53_s15 = scalar_lea.vmem %s15_s7, 128  ;;  %p58_p4 = scmp.lt.s32.totalorder %s15_s7, %s15_s7 }
   0x9   :  { %p54_p3 = scmp.ne.s32.totalorder %s15_s7, %s53_s15  ;;  %p59_p5 = scmp.lt.s32.totalorder %s53_s15, %s53_s15 }
   0xb   :  { %p60_p6 = por %p59_p5, %p58_p4 }
   0xd   :  { %p61_p7 = pnand %p60_p6, %p54_p3 }
   0xf   :  { %64 = shalt.err (!%p61_p7)
}
  0x10   :  { %17 = dma.hbm_to_vmem [thread:$0]  %s128_s0, 128, %s15_s7, [#allocation3]  }
  0x11   :  { %87 = dma.done.wait [#allocation3], 128  }
  0x12   :  { %88 = vsyncadd [#allocation3], 4294967168  ;;  %v21_v0 = vld [vmem:[#allocation2] sm:$0xff]  ;;  %s92_s18 = smov 1   ;;  %s93_s19 = smov [#allocation5]  }
  0x13   :  { %22 = vrot.lane.b32.xlu0 %v21_v0, %s92_s18  ;;  %s31_s20 = sshll.u32 %s93_s19, 4  ;;  %s32_s20 = int_to_ptr.vmem [resolvable:$true] %s31_s20 }
  0x14   :  { %s65_s21 = scalar_lea.vmem %s32_s20, 128  ;;  %p70_p9 = scmp.lt.s32.totalorder %s32_s20, %s32_s20 }
  0x15   :  { %p66_p8 = scmp.ne.s32.totalorder %s32_s20, %s65_s21  ;;  %p71_p10 = scmp.lt.s32.totalorder %s65_s21, %s65_s21 }
  0x17   :  { %p72_p11 = por %p71_p10, %p70_p9 }
  0x19   :  { %p73_p12 = pnand %p72_p11, %p66_p8 }
  0x85   :  { %v23_v1 = vpop.permute.xlu0 %22 }
  0x86   :  { %24 = vst [vmem:[#allocation5] sm:$0xff] %v23_v1 }
  0x87   :  { %76 = shalt.err (!%p73_p12)
}
  0x88   :  { %s77_s0 = scalar_lea.hbm %s129_s1, 128 }
  0x89   :  { %p78_p13 = scmp.ne.s32.totalorder %s129_s1, %s77_s0  ;;  %p81_p0 = scmp.lt.u32.totalorder %s77_s0, %s129_s1 }
  0x8b   :  { %p83_p1 = pnand %p81_p0, %p78_p13 }
  0x8d   :  { %86 = shalt.err (!%p83_p1)
}
  0x8e   :  { %34 = dma.vmem_to_hbm [thread:$0]  %s32_s20, 128, %s129_s1, [#allocation4]  }
  0x8f   :  { %89 = dma.done.wait [#allocation4], 128  }
  0x90   :  { %90 = vsyncadd [#allocation4], 4294967168 }
  0x91   :  { %38 = vsyncpa [#allocation3], 1 }
  0x92   :  { %39 = vsyncpa [#allocation4], 1 }

</bundles_post_ra>
